<compile_context>
chip_gen: v7x
topology: tpu7x:2x2x1
jax: 0.10.0
libtpu: 0.0.40
codegen_flags: <defaults>
</compile_context>

<pallas_src>
import jax
import jax.numpy as jnp
from jax.experimental import pallas as pl
from jax.experimental.pallas import tpu as pltpu


SUBLANE = 8        # batch padding granularity (sublane width)
MAX_TM = 2048      # max batch-tile rows (amortizes per-grid-step overhead)
SPLIT_BATCH = 128  # batches >= this get >=2 tiles so v7x can use both TCs


def _round_up(n: int, m: int) -> int:
    return ((n + m - 1) // m) * m


def _cdiv(a: int, b: int) -> int:
    return (a + b - 1) // b


def mlp_kernel(x_ref, w1_ref, b1_ref, w2_ref, b2_ref, o_ref):
    # First linear + bias + ReLU. MXU matmul, f32 accumulation, VPU elementwise.
    h = jnp.dot(x_ref[...], w1_ref[...], preferred_element_type=jnp.float32)
    h = jnp.maximum(h + b1_ref[...], 0.0)          # (TM, H) + (1, H) broadcast
    # Second linear + bias.
    y = jnp.dot(h, w2_ref[...], preferred_element_type=jnp.float32)
    o_ref[...] = (y + b2_ref[...]).astype(o_ref.dtype)


@jax.jit
def net_forward(x, w1, b1, w2, b2):
    """Forward pass of Net. x: (B, num_inputs) -> (B, num_outputs).

    Weights in (in_features, out_features) layout, biases (1, features) or
    (features,). No padding of feature dims required.
    """
    B, in_f = x.shape
    _, hid = w1.shape
    _, out_f = w2.shape
    b1 = b1.reshape(1, hid).astype(jnp.float32)
    b2 = b2.reshape(1, out_f).astype(jnp.float32)
    x = x.astype(jnp.float32)

    # Balanced batch tiling: padding bounded by < one sublane group per tile.
    nt = _cdiv(B, MAX_TM)
    if B >= SPLIT_BATCH:
        nt = max(nt, 2)              # let "parallel" axis use both TCs on v7x
    tm = _round_up(_cdiv(B, nt), SUBLANE)
    bp = nt * tm

    if bp == B:
        xp = x                       # fast path: no pad HLO
    else:
        xp = jnp.pad(x, ((0, bp - B), (0, 0)))

    out = pl.pallas_call(
        mlp_kernel,
        out_shape=jax.ShapeDtypeStruct((bp, out_f), jnp.float32),
        grid=(nt,),
        in_specs=[
            # x: streamed in tm-row tiles along the batch grid axis,
            # feature dim unpadded (block dim == full array dim -> legal).
            pl.BlockSpec((tm, in_f), lambda i: (i, 0)),
            # Weights / biases: resident (same block every grid step).
            pl.BlockSpec((in_f, hid), lambda i: (0, 0)),
            pl.BlockSpec((1, hid), lambda i: (0, 0)),
            pl.BlockSpec((hid, out_f), lambda i: (0, 0)),
            pl.BlockSpec((1, out_f), lambda i: (0, 0)),
        ],
        # Output unpadded in the lane dim: num_outputs == full last dim.
        out_specs=pl.BlockSpec((tm, out_f), lambda i: (i, 0)),
        compiler_params=pltpu.CompilerParams(
            dimension_semantics=("parallel",)),  # megacore-shard batch on v7x
    )(xp, w1, b1, w2, b2)

    if bp != B:
        out = out[:B]                # fast path skips this slice entirely
    return out


def init_params(key, num_inputs, num_outputs, hidden_units):
    """Deterministic init mimicking nn.Linear's U(-1/sqrt(fan_in), 1/sqrt(fan_in))."""
    k1, k2, k3, k4 = jax.random.split(key, 4)
    bound1 = 1.0 / jnp.sqrt(num_inputs)
    bound2 = 1.0 / jnp.sqrt(hidden_units)
    w1 = jax.random.uniform(k1, (num_inputs, hidden_units), jnp.float32,
                            -bound1, bound1)
    b1 = jax.random.uniform(k2, (1, hidden_units), jnp.float32, -bound1, bound1)
    w2 = jax.random.uniform(k3, (hidden_units, num_outputs), jnp.float32,
                            -bound2, bound2)
    b2 = jax.random.uniform(k4, (1, num_outputs), jnp.float32, -bound2, bound2)
    return w1, b1, w2, b2


if __name__ == "__main__":
    # Small shapes consistent with the module's forward (state-vector MLP).
    num_inputs, hidden_units, num_outputs = 16, 32, 8

    key = jax.random.PRNGKey(0)
    kx1, kx2, kp = jax.random.split(key, 3)
    w1, b1, w2, b2 = init_params(kp, num_inputs, num_outputs, hidden_units)

    def ref_fwd(x):
        return jnp.maximum(x @ w1 + b1, 0.0) @ w2 + b2

    # Case 1: tiny act()-style batch (exercises the batch-pad path).
    x_small = jax.random.normal(kx1, (2, num_inputs), jnp.float32)
    out_small = jax.block_until_ready(net_forward(x_small, w1, b1, w2, b2))
    assert out_small.shape == (2, num_outputs)
    assert jnp.allclose(out_small, ref_fwd(x_small), atol=1e-5, rtol=1e-5)

    # Case 2: replay-batch shape (exercises the no-pad fast path).
    x_big = jax.random.normal(kx2, (64, num_inputs), jnp.float32)
    out_big = jax.block_until_ready(net_forward(x_big, w1, b1, w2, b2))
    assert out_big.shape == (64, num_outputs)
    assert jnp.allclose(out_big, ref_fwd(x_big), atol=1e-5, rtol=1e-5)

    print("KERNEL_OK")
</pallas_src>

<mosaic_0001>
module attributes {stable_mosaic.version = 11 : i64} {
  func.func @mlp_kernel(%arg0: i32, %arg1: memref<8x16xf32, #tpu.memory_space<vmem>>, %arg2: memref<16x32xf32, #tpu.memory_space<vmem>>, %arg3: memref<1x32xf32, #tpu.memory_space<vmem>>, %arg4: memref<32x8xf32, #tpu.memory_space<vmem>>, %arg5: memref<1x8xf32, #tpu.memory_space<vmem>>, %arg6: memref<8x8xf32, #tpu.memory_space<vmem>>) attributes {dimension_semantics = [#tpu.dimension_semantics<parallel>], iteration_bounds = array<i64: 1>, scalar_prefetch = 0 : i64, scratch_operands = 0 : i64, tpu.core_type = #tpu.core_type<tc>, window_params = [{transform_indices = @transform_0, window_bounds = array<i64: 8, 16>}, {pipeline_mode = #tpu.pipeline_mode<synchronous>, transform_indices = @transform_1, window_bounds = array<i64: 16, 32>}, {pipeline_mode = #tpu.pipeline_mode<synchronous>, transform_indices = @transform_2, window_bounds = array<i64: 1, 32>}, {pipeline_mode = #tpu.pipeline_mode<synchronous>, transform_indices = @transform_3, window_bounds = array<i64: 32, 8>}, {pipeline_mode = #tpu.pipeline_mode<synchronous>, transform_indices = @transform_4, window_bounds = array<i64: 1, 8>}, {transform_indices = @transform_5, window_bounds = array<i64: 8, 8>}]} {
    %c0 = arith.constant 0 : index
    %c0_0 = arith.constant 0 : index
    %0 = vector.load %arg1[%c0, %c0_0] : memref<8x16xf32, #tpu.memory_space<vmem>>, vector<8x16xf32>
    %c0_1 = arith.constant 0 : index
    %c0_2 = arith.constant 0 : index
    %1 = vector.load %arg2[%c0_1, %c0_2] : memref<16x32xf32, #tpu.memory_space<vmem>>, vector<16x32xf32>
    %cst = arith.constant dense<0.000000e+00> : vector<8x32xf32>
    %2 = tpu.matmul %0, %1, %cst {dimension_numbers = #tpu.dot_dimension_numbers<[1], [0], [0], [1], [0, 0, 1, 1], [], []>} : vector<8x16xf32>, vector<16x32xf32>, vector<8x32xf32> -> vector<8x32xf32>
    %c0_3 = arith.constant 0 : index
    %c0_4 = arith.constant 0 : index
    %3 = vector.load %arg3[%c0_3, %c0_4] : memref<1x32xf32, #tpu.memory_space<vmem>>, vector<1x32xf32>
    %4 = vector.broadcast %3 : vector<1x32xf32> to vector<8x32xf32>
    %5 = arith.addf %2, %4 : vector<8x32xf32>
    %cst_5 = arith.constant 0.000000e+00 : f32
    %6 = vector.broadcast %cst_5 : f32 to vector<8x32xf32>
    %7 = arith.maximumf %5, %6 : vector<8x32xf32>
    %c0_6 = arith.constant 0 : index
    %c0_7 = arith.constant 0 : index
    %8 = vector.load %arg4[%c0_6, %c0_7] : memref<32x8xf32, #tpu.memory_space<vmem>>, vector<32x8xf32>
    %cst_8 = arith.constant dense<0.000000e+00> : vector<8x8xf32>
    %9 = tpu.matmul %7, %8, %cst_8 {dimension_numbers = #tpu.dot_dimension_numbers<[1], [0], [0], [1], [0, 0, 1, 1], [], []>} : vector<8x32xf32>, vector<32x8xf32>, vector<8x8xf32> -> vector<8x8xf32>
    %c0_9 = arith.constant 0 : index
    %c0_10 = arith.constant 0 : index
    %10 = vector.load %arg5[%c0_9, %c0_10] : memref<1x8xf32, #tpu.memory_space<vmem>>, vector<1x8xf32>
    %11 = vector.broadcast %10 : vector<1x8xf32> to vector<8x8xf32>
    %12 = arith.addf %9, %11 : vector<8x8xf32>
    %c0_11 = arith.constant 0 : index
    %c0_12 = arith.constant 0 : index
    %13 = vector.load %arg6[%c0_11, %c0_12] : memref<8x8xf32, #tpu.memory_space<vmem>>, vector<8x8xf32>
    tpu.vector_store %arg6[%c0_11, %c0_12], %12 {strides = array<i32>} : memref<8x8xf32, #tpu.memory_space<vmem>>, vector<8x8xf32>,
    return
  }
  func.func @transform_0(%arg0: i32) -> (i32, i32) {
    %c0_i32 = arith.constant 0 : i32
    %c0_i32_0 = arith.constant 0 : i32
    return %arg0, %c0_i32 : i32, i32
  }
  func.func @transform_1(%arg0: i32) -> (i32, i32) {
    %c0_i32 = arith.constant 0 : i32
    %c0_i32_0 = arith.constant 0 : i32
    %c0_i32_1 = arith.constant 0 : i32
    return %c0_i32, %c0_i32_0 : i32, i32
  }
  func.func @transform_2(%arg0: i32) -> (i32, i32) {
    %c0_i32 = arith.constant 0 : i32
    %c0_i32_0 = arith.constant 0 : i32
    %c0_i32_1 = arith.constant 0 : i32
    return %c0_i32, %c0_i32_0 : i32, i32
  }
  func.func @transform_3(%arg0: i32) -> (i32, i32) {
    %c0_i32 = arith.constant 0 : i32
    %c0_i32_0 = arith.constant 0 : i32
    %c0_i32_1 = arith.constant 0 : i32
    return %c0_i32, %c0_i32_0 : i32, i32
  }
  func.func @transform_4(%arg0: i32) -> (i32, i32) {
    %c0_i32 = arith.constant 0 : i32
    %c0_i32_0 = arith.constant 0 : i32
    %c0_i32_1 = arith.constant 0 : i32
    return %c0_i32, %c0_i32_0 : i32, i32
  }
  func.func @transform_5(%arg0: i32) -> (i32, i32) {
    %c0_i32 = arith.constant 0 : i32
    %c0_i32_0 = arith.constant 0 : i32
    return %arg0, %c0_i32 : i32, i32
  }
}

</mosaic_0001>

<bundles_post_ra>
// kernel: net_forward.1
= control target key start
LH: loop header
LB: loop body
LE: loop exit
PB: predicated region body
PF: predicated region fallthrough
CT: control target
= control target key end

     0   :  { %v238_v0 = vmov 0.0|0.0   ;;  %vm239_vm0 = vmmov 0   ;;  %v240_v3 = vmov 0.0   ;;  %vm30_vm1 = vcmask 130048   ;;  %s301_s1 = inlined_call_operand.vmem [shape: f32[16,32], index: 1, kind: input, shape index: {}]   ;;  %s302_s3 = inlined_call_operand.vmem [shape: f32[32,8], index: 3, kind: input, shape index: {}]   ;;  %s303_s0 = inlined_call_operand.vmem [shape: f32[8,16], index: 0, kind: input, shape index: {}]   ;;  %s304_s2 = inlined_call_operand.vmem [shape: f32[1,32], index: 2, kind: input, shape index: {}]   ;;  %s305_s4 = inlined_call_operand.vmem [shape: f32[1,8], index: 4, kind: input, shape index: {}]   ;;  %s306_s5 = inlined_call_operand.vmem [shape: f32[8,8], index: 5, kind: output, shape index: {}]  }
   0x1   :  { %226 = vmatprep.subr.bf16.mxu0 %v238_v0  ;;  %v21_v1 = vld [vmem:[%s301_s1] sm:$0xff]  ;;  %v22_v2 = vld [vmem:[%s301_s1 + $0x8] sm:$0xff]  ;;  %212 = vmatprep.mubr.msk.f32.mxu0 %vm239_vm0, %v240_v3  ;;  %v107_v9 = vld [vmem:[%s302_s3 + $0x10] sm:$0xff]  ;;  %vm116_vm2 = vcmask 261120   ;;  %vm190_vm3 = vcmask 64512  }
   0x2   :  { %v227_v4 = vpack.c.bf16 %v22_v2, %v21_v1  ;;  %229 = vmatprep.subr.bf16.mxu1 %v238_v0  ;;  %v105_v5 = vld [vmem:[%s302_s3] sm:$0xff]  ;;  %v106_v6 = vld [vmem:[%s302_s3 + $0x8] sm:$0xff]  ;;  %223 = vmatprep.mubr.msk.f32.mxu1 %vm239_vm0, %v240_v3  ;;  %v108_v10 = vld [vmem:[%s302_s3 + $0x18] sm:$0xff] }
   0x3   :  { %v230_v7 = vpack.c.bf16 %v106_v6, %v105_v5  ;;  %v20_v8 = vld [vmem:[%s303_s0] sm:$0xff]  ;;  %v233_v11 = vpack.c.bf16 %v108_v10, %v107_v9 }
   0x4   :  { %228 = vmatpush3.bf16.msra.mxu0 %v227_v4  ;;  %v196_v12 = vld [vmem:[%s304_s2] ss:$0 sm:$0xff] }
   0x5   :  { %231 = vmatpush3.bf16.msra.mxu1 %v230_v7  ;;  %v198_v17 = vld [vmem:[%s305_s4] ss:$0 sm:$0xff] }
   0x6   :  { %232 = vmatprep.subr.bf16.mxu1 %v238_v0 }
   0x7   :  { %213 = vmatmul.mubr.msk.f32.vlgmr.msra.gmra.mrb[0].mxu0 %vm30_vm1, %v20_v8 }
   0x9   :  { %234 = vmatpush3.bf16.msra.mxu1 %v233_v11 }
  0xda   :  { %v100_v13 = vpop.f32.mrb[0].mxu0 }
  0xdb   :  { %v101_v14 = vadd.f32 %v196_v12, %v100_v13  ;;  %v214_v15 = vpop.f32.mrb[1].mxu0 }
  0xdd   :  { %v104_v16 = vmax.f32 %v101_v14, 0.0 }
  0xdf   :  { %224 = vmatmul.mubr.msk.f32.vlgmr.msra.gmra.mrb[0].mxu1 %vm116_vm2, %v104_v16 }
 0x1b2   :  { %v186_v18 = vpop.f32.mrb[0].mxu1 }
 0x1b3   :  { %v187_v19 = vadd.f32 %v198_v17, %v186_v18  ;;  %v225_v20 = vpop.f32.mrb[1].mxu1 }
 0x1b5   :  { %191 = vst.msk [vmem:[%s306_s5] sm:$0xff] %vm190_vm3, %v187_v19 }

</bundles_post_ra>
